<compile_context>
chip_gen: v6e
topology: v6e:2x2x1
jax: 0.10.0
libtpu: 0.0.40
codegen_flags: <defaults>
</compile_context>

<pallas_src>
import functools

import numpy as np
import jax
import jax.numpy as jnp
from jax.experimental import pallas as pl
from jax.experimental.pallas import tpu as pltpu

NEG_SLOPE = 0.01  # torch.nn.LeakyReLU default


def _leaky_relu(x):
    return jnp.where(x > 0, x, NEG_SLOPE * x)


def _round_up(x, m):
    return ((x + m - 1) // m) * m


# ----------------------------------------------------------------------------- kernel
def _fused_mlp_kernel(z_ref, z3_ref, w1_ref, b1_ref, w2_ref, b2_ref, w3_ref, b3_ref,
                      oz_ref, oz3_ref):
    """Fused 3-layer MLP over view-packed (block-diagonal) weights, both inputs.

    z, z3 : (tb, latent_dim)                 -- two separate inputs (no concat)
    W1    : (latent_dim, V*H)    b1: (1, V*H)
    W2    : (V*H, V*H)           b2: (1, V*H)      (block-diagonal)
    W3    : (V*H, OUT_PAD)       b3: (1, OUT_PAD)  (block-diag cols, lane-padded)
    oz/oz3: (tb, OUT_PAD)                    -- lane-dense (128-multiple) stores
    """
    w1 = w1_ref[...]
    b1 = b1_ref[...]
    w2 = w2_ref[...]
    b2 = b2_ref[...]
    w3 = w3_ref[...]
    b3 = b3_ref[...]

    def mlp(x):
        # Cast activations to the weight dtype (bf16 by default) so the MXU runs
        # native bf16; accumulate in f32 via preferred_element_type.
        h1 = jnp.dot(x.astype(w1.dtype), w1, preferred_element_type=jnp.float32) + b1
        h1 = _leaky_relu(h1)
        h2 = jnp.dot(h1.astype(w2.dtype), w2, preferred_element_type=jnp.float32) + b2
        h2 = _leaky_relu(h2)
        return jnp.dot(h2.astype(w3.dtype), w3, preferred_element_type=jnp.float32) + b3

    oz_ref[...] = mlp(z_ref[...]).astype(oz_ref.dtype)
    oz3_ref[...] = mlp(z3_ref[...]).astype(oz3_ref.dtype)


def _fused_mlp_pallas(z, z3, w1, b1, w2, b2, w3, b3):
    B, L = z.shape
    VH = w1.shape[1]
    OUT = w3.shape[1]  # lane-padded multiple of 128

    # Batch tile: whole array for small B; 128..2048-row tiles for large B so the
    # "parallel" batch axis can be sharded across v7x's two TensorCores while the
    # resident weights (<~130 KiB) stay far below v7x's 64 MiB VMEM.
    tb = B
    for cand in (2048, 1024, 512, 256, 128):
        if B >= cand and B % cand == 0:
            tb = cand
            break
    grid = (B // tb,)

    vmem = pltpu.MemorySpace.VMEM
    row_in = pl.BlockSpec((tb, L), lambda i: (i, 0), memory_space=vmem)
    row_out = pl.BlockSpec((tb, OUT), lambda i: (i, 0), memory_space=vmem)

    def const_spec(arr):
        return pl.BlockSpec(arr.shape, lambda i: (0, 0), memory_space=vmem)

    flops = int(2 * 2 * B * (L * VH + VH * VH + VH * OUT))
    bytes_accessed = int(
        (2 * B * L + 2 * B * OUT) * 4
        + sum(int(np.prod(a.shape)) * a.dtype.itemsize
              for a in (w1, b1, w2, b2, w3, b3)))

    return pl.pallas_call(
        _fused_mlp_kernel,
        grid=grid,
        in_specs=[row_in, row_in,
                  const_spec(w1), const_spec(b1),
                  const_spec(w2), const_spec(b2),
                  const_spec(w3), const_spec(b3)],
        out_specs=(row_out, row_out),
        out_shape=(jax.ShapeDtypeStruct((B, OUT), jnp.float32),
                   jax.ShapeDtypeStruct((B, OUT), jnp.float32)),
        compiler_params=pltpu.CompilerParams(dimension_semantics=("parallel",)),
        cost_estimate=pl.CostEstimate(flops=flops, transcendentals=0,
                                      bytes_accessed=bytes_accessed),
    )(z, z3, w1, b1, w2, b2, w3, b3)


@functools.partial(jax.jit, static_argnames=("n_views", "d_out"))
def _fused_forward(z, z3, w1, b1, w2, b2, w3, b3, *, n_views, d_out):
    """Single-dispatch forward: one kernel, one lane-slice + reshape, per-view split."""
    B = z.shape[0]
    yz, yz3 = _fused_mlp_pallas(z, z3, w1, b1, w2, b2, w3, b3)   # (B, OUT_PAD) x2
    yz = yz[:, :n_views * d_out].reshape(B, n_views, d_out)
    yz3 = yz3[:, :n_views * d_out].reshape(B, n_views, d_out)
    z_views = tuple(yz[:, i, :] for i in range(n_views))
    z3_views = tuple(yz3[:, i, :] for i in range(n_views))
    return z_views, z3_views


# ----------------------------------------------------------------------------- module
class CompositionEncMixPallas:
    """JAX/Pallas re-implementation of CompositionEncMix.forward."""

    def __init__(self, n_views, latent_dim, d_sub, hidden, d_out, key,
                 compute_dtype=jnp.bfloat16):
        self.n_views = n_views
        self.latent_dim = latent_dim
        self.d_sub = d_sub
        self.hidden = hidden
        self.d_out = d_out
        self.compute_dtype = compute_dtype
        # Per-view parameters kept in torch.nn.Linear convention: W is (out, in).
        self.params = []
        for _ in range(n_views):
            key, k1, k2, k3, k4, k5, k6 = jax.random.split(key, 7)
            w1 = jax.random.normal(k1, (hidden, d_sub), jnp.float32) * 0.1
            b1 = jax.random.normal(k2, (hidden,), jnp.float32) * 0.1
            w2 = jax.random.normal(k3, (hidden, hidden), jnp.float32) * 0.1
            b2 = jax.random.normal(k4, (hidden,), jnp.float32) * 0.1
            w3 = jax.random.normal(k5, (d_out, hidden), jnp.float32) * 0.1
            b3 = jax.random.normal(k6, (d_out,), jnp.float32) * 0.1
            self.params.append((w1, b1, w2, b2, w3, b3))
        self._packed_cache = {}  # keyed by the (static) S_k tuple

    # ---- build the view-packed block-diagonal parameters (host-side, cached) ----
    def _packed(self, S_k):
        key = tuple(tuple(int(j) for j in s) for s in S_k)
        if key in self._packed_cache:
            return self._packed_cache[key]
        V, H, D, L = self.n_views, self.hidden, self.d_out, self.latent_dim
        OUT = max(128, _round_up(V * D, 128))     # lane-dense (unmasked) output stores
        W1 = np.zeros((L, V * H), np.float32)
        B1 = np.zeros((1, V * H), np.float32)
        W2 = np.zeros((V * H, V * H), np.float32)
        B2 = np.zeros((1, V * H), np.float32)
        W3 = np.zeros((V * H, OUT), np.float32)
        B3 = np.zeros((1, OUT), np.float32)
        for i, (w1, b1, w2, b2, w3, b3) in enumerate(self.params):
            rows = np.asarray(key[i], dtype=np.int64)
            assert rows.ndim == 1 and rows.size == self.d_sub
            assert np.all((rows >= 0) & (rows < L)), "S_k index out of range"
            # Fold the S_k column gather + transpose into W1.  np.add.at sums
            # contributions, so duplicate indices in S_k[i] match the reference
            # gather semantics (two gathered copies of the same column).
            np.add.at(W1[:, i * H:(i + 1) * H], rows, np.asarray(w1, np.float32).T)
            B1[0, i * H:(i + 1) * H] = np.asarray(b1, np.float32)
            W2[i * H:(i + 1) * H, i * H:(i + 1) * H] = np.asarray(w2, np.float32).T
            B2[0, i * H:(i + 1) * H] = np.asarray(b2, np.float32)
            W3[i * H:(i + 1) * H, i * D:(i + 1) * D] = np.asarray(w3, np.float32).T
            B3[0, i * D:(i + 1) * D] = np.asarray(b3, np.float32)
        cd = self.compute_dtype
        packed = (jnp.asarray(W1, dtype=cd), jnp.asarray(B1, dtype=jnp.float32),
                  jnp.asarray(W2, dtype=cd), jnp.asarray(B2, dtype=jnp.float32),
                  jnp.asarray(W3, dtype=cd), jnp.asarray(B3, dtype=jnp.float32))
        self._packed_cache[key] = packed
        return packed

    def forward(self, z, z3, S_k, n_views=4):
        assert n_views == self.n_views, "n_views argument must match model n_views"
        w1, b1, w2, b2, w3, b3 = self._packed(S_k)
        z_views, z3_views = _fused_forward(
            z, z3, w1, b1, w2, b2, w3, b3, n_views=self.n_views, d_out=self.d_out)
        z_rec = list(z_views)
        z3_rec = list(z3_views)
        hzs = {i: {"hz": z_rec[i]} for i in range(self.n_views)}
        return (z_rec, z3_rec, hzs)


# ----------------------------------------------------------------------------- reference
def _reference_mlp(x, w1, b1, w2, b2, w3, b3):
    """Pure-JAX f32 reference of one view's H[i] (torch (out,in) weight convention)."""
    h1 = _leaky_relu(x @ w1.T + b1)
    h2 = _leaky_relu(h1 @ w2.T + b2)
    return h2 @ w3.T + b3


if __name__ == "__main__":
    key = jax.random.PRNGKey(0)
    k_model, k_z, k_z3 = jax.random.split(key, 3)

    n_views = 4
    batch = 8
    latent_dim = 8   # full latent dimension of z / z3
    d_sub = 4        # |S_k[i]|
    hidden = 32      # packed hidden width = 4*32 = 128 (one full vreg lane width)
    d_out = 4        # packed output padded 16 -> 128 lanes

    model = CompositionEncMixPallas(n_views, latent_dim, d_sub, hidden, d_out, k_model,
                                    compute_dtype=jnp.bfloat16)

    z = jax.random.normal(k_z, (batch, latent_dim), jnp.float32)
    z3 = jax.random.normal(k_z3, (batch, latent_dim), jnp.float32)
    S_k = [[0, 1, 2, 3], [2, 3, 4, 5], [4, 5, 6, 7], [0, 2, 4, 6]]

    z_rec, z3_rec, hzs = model.forward(z, z3, S_k, n_views=n_views)
    jax.block_until_ready((z_rec, z3_rec))

    # Validate every view (both inputs) against a pure-JAX f32 reference.
    # Tolerance accounts for bf16 weights/activations (f32 accumulation).
    for i in range(n_views):
        w1, b1, w2, b2, w3, b3 = model.params[i]
        cols = jnp.asarray(S_k[i])
        ref_z = _reference_mlp(z[:, cols], w1, b1, w2, b2, w3, b3)
        ref_z3 = _reference_mlp(z3[:, cols], w1, b1, w2, b2, w3, b3)
        assert z_rec[i].shape == (batch, d_out)
        assert z3_rec[i].shape == (batch, d_out)
        assert jnp.allclose(z_rec[i], ref_z, atol=5e-2, rtol=5e-2)
        assert jnp.allclose(z3_rec[i], ref_z3, atol=5e-2, rtol=5e-2)
        assert hzs[i]["hz"].shape == (batch, d_out)

    print("KERNEL_OK")
</pallas_src>

<mosaic_0001>
module attributes {stable_mosaic.version = 11 : i64} {
  func.func @_fused_mlp_kernel(%arg0: i32, %arg1: memref<8x8xf32, #tpu.memory_space<vmem>>, %arg2: memref<8x8xf32, #tpu.memory_space<vmem>>, %arg3: memref<8x128xbf16, #tpu.memory_space<vmem>>, %arg4: memref<1x128xf32, #tpu.memory_space<vmem>>, %arg5: memref<128x128xbf16, #tpu.memory_space<vmem>>, %arg6: memref<1x128xf32, #tpu.memory_space<vmem>>, %arg7: memref<128x128xbf16, #tpu.memory_space<vmem>>, %arg8: memref<1x128xf32, #tpu.memory_space<vmem>>, %arg9: memref<8x128xf32, #tpu.memory_space<vmem>>, %arg10: memref<8x128xf32, #tpu.memory_space<vmem>>) attributes {dimension_semantics = [#tpu.dimension_semantics<parallel>], iteration_bounds = array<i64: 1>, scalar_prefetch = 0 : i64, scratch_operands = 0 : i64, tpu.core_type = #tpu.core_type<tc>, window_params = [{transform_indices = @transform_0, window_bounds = array<i64: 8, 8>}, {transform_indices = @transform_1, window_bounds = array<i64: 8, 8>}, {pipeline_mode = #tpu.pipeline_mode<synchronous>, transform_indices = @transform_2, window_bounds = array<i64: 8, 128>}, {pipeline_mode = #tpu.pipeline_mode<synchronous>, transform_indices = @transform_3, window_bounds = array<i64: 1, 128>}, {pipeline_mode = #tpu.pipeline_mode<synchronous>, transform_indices = @transform_4, window_bounds = array<i64: 128, 128>}, {pipeline_mode = #tpu.pipeline_mode<synchronous>, transform_indices = @transform_5, window_bounds = array<i64: 1, 128>}, {pipeline_mode = #tpu.pipeline_mode<synchronous>, transform_indices = @transform_6, window_bounds = array<i64: 128, 128>}, {pipeline_mode = #tpu.pipeline_mode<synchronous>, transform_indices = @transform_7, window_bounds = array<i64: 1, 128>}, {transform_indices = @transform_8, window_bounds = array<i64: 8, 128>}, {transform_indices = @transform_9, window_bounds = array<i64: 8, 128>}]} {
    %c0 = arith.constant 0 : index
    %c0_0 = arith.constant 0 : index
    %0 = vector.load %arg3[%c0, %c0_0] : memref<8x128xbf16, #tpu.memory_space<vmem>>, vector<8x128xbf16>
    %c0_1 = arith.constant 0 : index
    %c0_2 = arith.constant 0 : index
    %1 = vector.load %arg4[%c0_1, %c0_2] : memref<1x128xf32, #tpu.memory_space<vmem>>, vector<1x128xf32>
    %c0_3 = arith.constant 0 : index
    %c0_4 = arith.constant 0 : index
    %2 = vector.load %arg5[%c0_3, %c0_4] : memref<128x128xbf16, #tpu.memory_space<vmem>>, vector<128x128xbf16>
    %c0_5 = arith.constant 0 : index
    %c0_6 = arith.constant 0 : index
    %3 = vector.load %arg6[%c0_5, %c0_6] : memref<1x128xf32, #tpu.memory_space<vmem>>, vector<1x128xf32>
    %c0_7 = arith.constant 0 : index
    %c0_8 = arith.constant 0 : index
    %4 = vector.load %arg7[%c0_7, %c0_8] : memref<128x128xbf16, #tpu.memory_space<vmem>>, vector<128x128xbf16>
    %c0_9 = arith.constant 0 : index
    %c0_10 = arith.constant 0 : index
    %5 = vector.load %arg8[%c0_9, %c0_10] : memref<1x128xf32, #tpu.memory_space<vmem>>, vector<1x128xf32>
    %c0_11 = arith.constant 0 : index
    %c0_12 = arith.constant 0 : index
    %6 = vector.load %arg1[%c0_11, %c0_12] : memref<8x8xf32, #tpu.memory_space<vmem>>, vector<8x8xf32>
    %7 = arith.truncf %6 : vector<8x8xf32> to vector<8x8xbf16>
    %cst = arith.constant dense<0.000000e+00> : vector<8x128xf32>
    %8 = tpu.matmul %7, %0, %cst {dimension_numbers = #tpu.dot_dimension_numbers<[1], [0], [0], [1], [0, 0, 1, 1], [], []>} : vector<8x8xbf16>, vector<8x128xbf16>, vector<8x128xf32> -> vector<8x128xf32>
    %9 = vector.broadcast %1 : vector<1x128xf32> to vector<8x128xf32>
    %10 = arith.addf %8, %9 : vector<8x128xf32>
    %cst_13 = arith.constant 0.000000e+00 : f32
    %11 = vector.broadcast %cst_13 : f32 to vector<8x128xf32>
    %12 = arith.cmpf ogt, %10, %11 : vector<8x128xf32>
    %cst_14 = arith.constant 0.00999999977 : f32
    %13 = vector.broadcast %cst_14 : f32 to vector<8x128xf32>
    %14 = arith.mulf %13, %10 : vector<8x128xf32>
    %15 = arith.select %12, %10, %14 : vector<8x128xi1>, vector<8x128xf32>
    %16 = arith.truncf %15 : vector<8x128xf32> to vector<8x128xbf16>
    %cst_15 = arith.constant dense<0.000000e+00> : vector<8x128xf32>
    %17 = tpu.matmul %16, %2, %cst_15 {dimension_numbers = #tpu.dot_dimension_numbers<[1], [0], [0], [1], [0, 0, 1, 1], [], []>} : vector<8x128xbf16>, vector<128x128xbf16>, vector<8x128xf32> -> vector<8x128xf32>
    %18 = vector.broadcast %3 : vector<1x128xf32> to vector<8x128xf32>
    %19 = arith.addf %17, %18 : vector<8x128xf32>
    %cst_16 = arith.constant 0.000000e+00 : f32
    %20 = vector.broadcast %cst_16 : f32 to vector<8x128xf32>
    %21 = arith.cmpf ogt, %19, %20 : vector<8x128xf32>
    %cst_17 = arith.constant 0.00999999977 : f32
    %22 = vector.broadcast %cst_17 : f32 to vector<8x128xf32>
    %23 = arith.mulf %22, %19 : vector<8x128xf32>
    %24 = arith.select %21, %19, %23 : vector<8x128xi1>, vector<8x128xf32>
    %25 = arith.truncf %24 : vector<8x128xf32> to vector<8x128xbf16>
    %cst_18 = arith.constant dense<0.000000e+00> : vector<8x128xf32>
    %26 = tpu.matmul %25, %4, %cst_18 {dimension_numbers = #tpu.dot_dimension_numbers<[1], [0], [0], [1], [0, 0, 1, 1], [], []>} : vector<8x128xbf16>, vector<128x128xbf16>, vector<8x128xf32> -> vector<8x128xf32>
    %27 = vector.broadcast %5 : vector<1x128xf32> to vector<8x128xf32>
    %28 = arith.addf %26, %27 : vector<8x128xf32>
    %c0_19 = arith.constant 0 : index
    %c0_20 = arith.constant 0 : index
    %29 = vector.load %arg9[%c0_19, %c0_20] : memref<8x128xf32, #tpu.memory_space<vmem>>, vector<8x128xf32>
    tpu.vector_store %arg9[%c0_19, %c0_20], %28 {strides = array<i32>} : memref<8x128xf32, #tpu.memory_space<vmem>>, vector<8x128xf32>,
    %c0_21 = arith.constant 0 : index
    %c0_22 = arith.constant 0 : index
    %30 = vector.load %arg2[%c0_21, %c0_22] : memref<8x8xf32, #tpu.memory_space<vmem>>, vector<8x8xf32>
    %31 = arith.truncf %30 : vector<8x8xf32> to vector<8x8xbf16>
    %cst_23 = arith.constant dense<0.000000e+00> : vector<8x128xf32>
    %32 = tpu.matmul %31, %0, %cst_23 {dimension_numbers = #tpu.dot_dimension_numbers<[1], [0], [0], [1], [0, 0, 1, 1], [], []>} : vector<8x8xbf16>, vector<8x128xbf16>, vector<8x128xf32> -> vector<8x128xf32>
    %33 = vector.broadcast %1 : vector<1x128xf32> to vector<8x128xf32>
    %34 = arith.addf %32, %33 : vector<8x128xf32>
    %cst_24 = arith.constant 0.000000e+00 : f32
    %35 = vector.broadcast %cst_24 : f32 to vector<8x128xf32>
    %36 = arith.cmpf ogt, %34, %35 : vector<8x128xf32>
    %cst_25 = arith.constant 0.00999999977 : f32
    %37 = vector.broadcast %cst_25 : f32 to vector<8x128xf32>
    %38 = arith.mulf %37, %34 : vector<8x128xf32>
    %39 = arith.select %36, %34, %38 : vector<8x128xi1>, vector<8x128xf32>
    %40 = arith.truncf %39 : vector<8x128xf32> to vector<8x128xbf16>
    %cst_26 = arith.constant dense<0.000000e+00> : vector<8x128xf32>
    %41 = tpu.matmul %40, %2, %cst_26 {dimension_numbers = #tpu.dot_dimension_numbers<[1], [0], [0], [1], [0, 0, 1, 1], [], []>} : vector<8x128xbf16>, vector<128x128xbf16>, vector<8x128xf32> -> vector<8x128xf32>
    %42 = vector.broadcast %3 : vector<1x128xf32> to vector<8x128xf32>
    %43 = arith.addf %41, %42 : vector<8x128xf32>
    %cst_27 = arith.constant 0.000000e+00 : f32
    %44 = vector.broadcast %cst_27 : f32 to vector<8x128xf32>
    %45 = arith.cmpf ogt, %43, %44 : vector<8x128xf32>
    %cst_28 = arith.constant 0.00999999977 : f32
    %46 = vector.broadcast %cst_28 : f32 to vector<8x128xf32>
    %47 = arith.mulf %46, %43 : vector<8x128xf32>
    %48 = arith.select %45, %43, %47 : vector<8x128xi1>, vector<8x128xf32>
    %49 = arith.truncf %48 : vector<8x128xf32> to vector<8x128xbf16>
    %cst_29 = arith.constant dense<0.000000e+00> : vector<8x128xf32>
    %50 = tpu.matmul %49, %4, %cst_29 {dimension_numbers = #tpu.dot_dimension_numbers<[1], [0], [0], [1], [0, 0, 1, 1], [], []>} : vector<8x128xbf16>, vector<128x128xbf16>, vector<8x128xf32> -> vector<8x128xf32>
    %51 = vector.broadcast %5 : vector<1x128xf32> to vector<8x128xf32>
    %52 = arith.addf %50, %51 : vector<8x128xf32>
    %c0_30 = arith.constant 0 : index
    %c0_31 = arith.constant 0 : index
    %53 = vector.load %arg10[%c0_30, %c0_31] : memref<8x128xf32, #tpu.memory_space<vmem>>, vector<8x128xf32>
    tpu.vector_store %arg10[%c0_30, %c0_31], %52 {strides = array<i32>} : memref<8x128xf32, #tpu.memory_space<vmem>>, vector<8x128xf32>,
    return
  }
  func.func @transform_0(%arg0: i32) -> (i32, i32) {
    %c0_i32 = arith.constant 0 : i32
    %c0_i32_0 = arith.constant 0 : i32
    return %arg0, %c0_i32 : i32, i32
  }
  func.func @transform_1(%arg0: i32) -> (i32, i32) {
    %c0_i32 = arith.constant 0 : i32
    %c0_i32_0 = arith.constant 0 : i32
    return %arg0, %c0_i32 : i32, i32
  }
  func.func @transform_2(%arg0: i32) -> (i32, i32) {
    %c0_i32 = arith.constant 0 : i32
    %c0_i32_0 = arith.constant 0 : i32
    %c0_i32_1 = arith.constant 0 : i32
    return %c0_i32, %c0_i32_0 : i32, i32
  }
  func.func @transform_3(%arg0: i32) -> (i32, i32) {
    %c0_i32 = arith.constant 0 : i32
    %c0_i32_0 = arith.constant 0 : i32
    %c0_i32_1 = arith.constant 0 : i32
    return %c0_i32, %c0_i32_0 : i32, i32
  }
  func.func @transform_4(%arg0: i32) -> (i32, i32) {
    %c0_i32 = arith.constant 0 : i32
    %c0_i32_0 = arith.constant 0 : i32
    %c0_i32_1 = arith.constant 0 : i32
    return %c0_i32, %c0_i32_0 : i32, i32
  }
  func.func @transform_5(%arg0: i32) -> (i32, i32) {
    %c0_i32 = arith.constant 0 : i32
    %c0_i32_0 = arith.constant 0 : i32
    %c0_i32_1 = arith.constant 0 : i32
    return %c0_i32, %c0_i32_0 : i32, i32
  }
  func.func @transform_6(%arg0: i32) -> (i32, i32) {
    %c0_i32 = arith.constant 0 : i32
    %c0_i32_0 = arith.constant 0 : i32
    %c0_i32_1 = arith.constant 0 : i32
    return %c0_i32, %c0_i32_0 : i32, i32
  }
  func.func @transform_7(%arg0: i32) -> (i32, i32) {
    %c0_i32 = arith.constant 0 : i32
    %c0_i32_0 = arith.constant 0 : i32
    %c0_i32_1 = arith.constant 0 : i32
    return %c0_i32, %c0_i32_0 : i32, i32
  }
  func.func @transform_8(%arg0: i32) -> (i32, i32) {
    %c0_i32 = arith.constant 0 : i32
    %c0_i32_0 = arith.constant 0 : i32
    return %arg0, %c0_i32 : i32, i32
  }
  func.func @transform_9(%arg0: i32) -> (i32, i32) {
    %c0_i32 = arith.constant 0 : i32
    %c0_i32_0 = arith.constant 0 : i32
    return %arg0, %c0_i32 : i32, i32
  }
}

</mosaic_0001>

<bundles_post_ra>
// kernel: _fused_forward.1
= control target key start
LH: loop header
LB: loop body
LE: loop exit
PB: predicated region body
PF: predicated region fallthrough
CT: control target
= control target key end

     0   :  { %15 = vsyncpa [#allocation3], 0  ;;  %s991_s0 = inlined_call_operand.hbm [shape: f32[8,8], index: 0, kind: input, shape index: {}]   ;;  %s992_s1 = inlined_call_operand.hbm [shape: f32[8,8], index: 1, kind: input, shape index: {}]   ;;  %s993_s2 = inlined_call_operand.hbm [shape: bf16[8,128], index: 2, kind: input, shape index: {}]   ;;  %s994_s3 = inlined_call_operand.vmem [shape: f32[1,128], index: 3, kind: input, shape index: {}]   ;;  %s995_s4 = inlined_call_operand.hbm [shape: bf16[128,128], index: 4, kind: input, shape index: {}]   ;;  %s996_s5 = inlined_call_operand.vmem [shape: f32[1,128], index: 5, kind: input, shape index: {}]   ;;  %s997_s6 = inlined_call_operand.hbm [shape: bf16[128,128], index: 6, kind: input, shape index: {}]   ;;  %s998_s7 = inlined_call_operand.vmem [shape: f32[1,128], index: 7, kind: input, shape index: {}]   ;;  %s999_s8 = inlined_call_operand.vmem [shape: f32[8,128], index: 8, kind: output, shape index: {0}]   ;;  %s1000_s9 = inlined_call_operand.vmem [shape: f32[8,128], index: 9, kind: output, shape index: {1}]  }
   0x1   :  { %16 = vsyncpa [#allocation5], 0 }
   0x2   :  { %17 = vsyncpa [#allocation8], 0  ;;  %s812_s30 = smov [#allocation4]   ;;  %s813_s11 = smov [#allocation7]  }
   0x3   :  { %s34_s10 = sshll.u32 %s812_s30, 4  ;;  %s55_s12 = sshll.u32 %s813_s11, 4  ;;  %s35_s10 = int_to_ptr.vmem [resolvable:$true] %s34_s10  ;;  %s56_s12 = int_to_ptr.vmem [resolvable:$true] %s55_s12 }
   0x4   :  { %s714_s13 = scalar_lea.vmem %s35_s10, 128  ;;  %p719_p1 = scmp.lt.s32.totalorder %s35_s10, %s35_s10 }
   0x5   :  { %p715_p0 = scmp.ne.s32.totalorder %s35_s10, %s714_s13  ;;  %p720_p2 = scmp.lt.s32.totalorder %s714_s13, %s714_s13 }
   0x7   :  { %p721_p3 = por %p720_p2, %p719_p1 }
   0x9   :  { %p722_p4 = pnand %p721_p3, %p715_p0 }
   0xb   :  { %725 = shalt.err (!%p722_p4)
}
   0xc   :  { %37 = dma.hbm_to_vmem [thread:$0]  %s992_s1, 128, %s35_s10, [#allocation5]  }
   0xd   :  { %s734_s16 = scalar_lea.vmem %s56_s12, 1024  ;;  %p739_p6 = scmp.lt.s32.totalorder %s56_s12, %s56_s12 }
   0xe   :  { %p735_p5 = scmp.ne.s32.totalorder %s56_s12, %s734_s16  ;;  %p740_p7 = scmp.lt.s32.totalorder %s734_s16, %s734_s16 }
  0x10   :  { %p741_p8 = por %p740_p7, %p739_p6 }
  0x12   :  { %p742_p9 = pnand %p741_p8, %p735_p5 }
  0x14   :  { %745 = shalt.err (!%p742_p9)
}
  0x15   :  { %s814_s17 = smov 64   ;;  %s815_s18 = smov 4  }
  0x16   :  { %61 = dma.hbm_to_vmem [thread:$0]  %s995_s4, 1024, %s56_s12, [#allocation8], %s814_s17, %s814_s17, %s815_s18  }
  0x17   :  { %s816_s21 = smov [#allocation2]   ;;  %s817_s23 = smov [#allocation6]  }
  0x18   :  { %s24_s22 = sshll.u32 %s816_s21, 4  ;;  %s44_s1 = sshll.u32 %s817_s23, 4  ;;  %s25_s22 = int_to_ptr.vmem [resolvable:$true] %s24_s22  ;;  %s45_s1 = int_to_ptr.vmem [resolvable:$true] %s44_s1 }
  0x19   :  { %s754_s24 = scalar_lea.vmem %s25_s22, 128  ;;  %p759_p11 = scmp.lt.s32.totalorder %s25_s22, %s25_s22 }
  0x1a   :  { %p755_p10 = scmp.ne.s32.totalorder %s25_s22, %s754_s24  ;;  %p760_p12 = scmp.lt.s32.totalorder %s754_s24, %s754_s24 }
  0x1c   :  { %p761_p13 = por %p760_p12, %p759_p11 }
  0x1e   :  { %p762_p0 = pnand %p761_p13, %p755_p10 }
  0x20   :  { %765 = shalt.err (!%p762_p0)
}
  0x21   :  { %27 = dma.hbm_to_vmem [thread:$0]  %s991_s0, 128, %s25_s22, [#allocation3]  }
  0x22   :  { %s774_s27 = scalar_lea.vmem %s45_s1, 64  ;;  %p779_p2 = scmp.lt.s32.totalorder %s45_s1, %s45_s1 }
  0x23   :  { %p775_p1 = scmp.ne.s32.totalorder %s45_s1, %s774_s27  ;;  %p780_p3 = scmp.lt.s32.totalorder %s774_s27, %s774_s27 }
  0x25   :  { %p781_p4 = por %p780_p3, %p779_p2 }
  0x27   :  { %p782_p5 = pnand %p781_p4, %p775_p1 }
  0x29   :  { %785 = shalt.err (!%p782_p5)
}
  0x2a   :  { %47 = dma.hbm_to_vmem [thread:$0]  %s993_s2, 64, %s45_s1, [#allocation5]  }
  0x2b   :  { %s818_s29 = smov [#allocation9]  }
  0x2c   :  { %s69_s30 = sshll.u32 %s818_s29, 4  ;;  %s70_s30 = int_to_ptr.vmem [resolvable:$true] %s69_s30 }
  0x2d   :  { %s794_s10 = scalar_lea.vmem %s70_s30, 1024  ;;  %p799_p7 = scmp.lt.s32.totalorder %s70_s30, %s70_s30 }
  0x2e   :  { %p795_p6 = scmp.ne.s32.totalorder %s70_s30, %s794_s10  ;;  %p800_p8 = scmp.lt.s32.totalorder %s794_s10, %s794_s10 }
  0x30   :  { %p801_p9 = por %p800_p8, %p799_p7 }
  0x32   :  { %p802_p10 = pnand %p801_p9, %p795_p6 }
  0x34   :  { %805 = shalt.err (!%p802_p10)
}
  0x35   :  { %75 = dma.hbm_to_vmem [thread:$0]  %s997_s6, 1024, %s70_s30, [#allocation8], %s814_s17, %s814_s17, %s815_s18  }
  0x36   :  { %806 = dma.done.wait [#allocation3], 128  }
  0x37   :  { %807 = vsyncadd [#allocation3], 4294967168 }
  0x38   :  { %808 = dma.done.wait [#allocation5], 192  }
  0x39   :  { %809 = vsyncadd [#allocation5], 4294967104 }
  0x3a   :  { %810 = dma.done.wait [#allocation8], 2048  }
  0x3b   :  { %811 = vsyncadd [#allocation8], 4294965248  ;;  %v819_v0 = vmov 0.0   ;;  %vm820_vm0 = vmmov 0   ;;  %vm142_vm1 = vcmask 1043456   ;;  %v130_v2 = vld [vmem:[#allocation2] sm:$0xff] }
  0x3c   :  { %589 = vmatprep.subr.bf16.mxu0 %v819_v0  ;;  %591 = vmatprep.mubr.msk.bf16.mxu0 %vm820_vm0, %v819_v0  ;;  %v94_v1 = vld [vmem:[#allocation6] sm:$0xf]  ;;  %v131_v4 = vpack.c.bf16 %v130_v2, %v130_v2  ;;  %vm138_vm2 = vcmask 64512   ;;  %v901_v6 = vld [vmem:[#allocation7 + $0x30] sm:$0xff]   ;;  %v906_v7 = vld [vmem:[#allocation7 + $0x28] sm:$0xff]  }
  0x3d   :  { %595 = vmatprep.subr.bf16.mxu1 %v819_v0  ;;  %611 = vmatprep.mubr.msk.bf16.mxu1 %vm820_vm0, %v819_v0  ;;  %v144_v3 = vsel %vm142_vm1, %v94_v1, 0  ;;  %v898_v5 = vld [vmem:[#allocation7 + $0x38] sm:$0xff]   ;;  %v912_v8 = vld [vmem:[#allocation7 + $0x20] sm:$0xff]   ;;  %v921_v10 = vld [vmem:[#allocation7 + $0x10] sm:$0xff]  }
  0x3e   :  { %590 = vmatpush3.bf16.msra.mxu0 %v144_v3  ;;  %596 = vmatpush3.bf16.msra.mxu1 %v898_v5  ;;  %v917_v9 = vld [vmem:[#allocation7 + $0x18] sm:$0xff]   ;;  %v926_v11 = vld [vmem:[#allocation7 + $0x8] sm:$0xff]   ;;  %v930_v12 = vld [vmem:[#allocation7] sm:$0xff]  }
  0x3f   :  { %615 = vmatprep.subr.bf16.mxu0 %v819_v0  ;;  %597 = vmatprep.subr.bf16.mxu1 %v819_v0  ;;  %v698_v13 = vld [vmem:[#allocation9 + $0x38] sm:$0xff]   ;;  %v699_v14 = vld [vmem:[#allocation9 + $0x30] sm:$0xff]   ;;  %v700_v15 = vld [vmem:[#allocation9 + $0x28] sm:$0xff]  }
  0x40   :  { %v701_v16 = vld [vmem:[#allocation9 + $0x20] sm:$0xff]   ;;  %v702_v17 = vld [vmem:[#allocation9 + $0x18] sm:$0xff]   ;;  %v703_v18 = vld [vmem:[#allocation9 + $0x10] sm:$0xff]  }
  0x41   :  { %592 = vmatmul.mubr.msk.bf16.vlgmr.msra.gmra.mxu0 %vm138_vm2, %v131_v4  ;;  %v943_v19 = vld [vmem:[%s994_s3] ss:$0 sm:$0xff]  ;;  %v383_v28 = vld [vmem:[#allocation4] sm:$0xff]  ;;  %v705_v31 = vld [vmem:[#allocation9] sm:$0xff]  }
  0x42   :  { %631 = vmatprep.mubr.msk.bf16.mxu0 %vm820_vm0, %v819_v0  ;;  %598 = vmatpush3.bf16.msra.mxu1 %v901_v6  ;;  %v384_v29 = vpack.c.bf16 %v383_v28, %v383_v28  ;;  %v704_v30 = vld [vmem:[#allocation9 + $0x8] sm:$0xff]  }
  0x43   :  { %599 = vmatprep.subr.bf16.mxu1 %v819_v0  ;;  %616 = vmatpush3.bf16.msra.mxu0 %v698_v13  ;;  %v530_v32 = vld [vmem:[%s996_s5] ss:$0 sm:$0xff] }
  0x44   :  { %617 = vmatprep.subr.bf16.mxu0 %v819_v0  ;;  %v539_v49 = vld [vmem:[%s998_s7] ss:$0 sm:$0xff] }
  0x46   :  { %600 = vmatpush3.bf16.msra.mxu1 %v906_v7 }
  0x47   :  { %601 = vmatprep.subr.bf16.mxu1 %v819_v0  ;;  %618 = vmatpush3.bf16.msra.mxu0 %v699_v14 }
  0x48   :  { %619 = vmatprep.subr.bf16.mxu0 %v819_v0 }
  0x4a   :  { %602 = vmatpush3.bf16.msra.mxu1 %v912_v8 }
  0x4b   :  { %603 = vmatprep.subr.bf16.mxu1 %v819_v0  ;;  %620 = vmatpush3.bf16.msra.mxu0 %v700_v15 }
  0x4c   :  { %621 = vmatprep.subr.bf16.mxu0 %v819_v0 }
  0x4e   :  { %604 = vmatpush3.bf16.msra.mxu1 %v917_v9 }
  0x4f   :  { %605 = vmatprep.subr.bf16.mxu1 %v819_v0  ;;  %622 = vmatpush3.bf16.msra.mxu0 %v701_v16 }
  0x50   :  { %623 = vmatprep.subr.bf16.mxu0 %v819_v0 }
  0x52   :  { %606 = vmatpush3.bf16.msra.mxu1 %v921_v10 }
  0x53   :  { %607 = vmatprep.subr.bf16.mxu1 %v819_v0  ;;  %624 = vmatpush3.bf16.msra.mxu0 %v702_v17 }
  0x54   :  { %625 = vmatprep.subr.bf16.mxu0 %v819_v0 }
  0x56   :  { %608 = vmatpush3.bf16.msra.mxu1 %v926_v11 }
  0x57   :  { %609 = vmatprep.subr.bf16.mxu1 %v819_v0  ;;  %626 = vmatpush3.bf16.msra.mxu0 %v703_v18 }
  0x58   :  { %627 = vmatprep.subr.bf16.mxu0 %v819_v0 }
  0x5a   :  { %610 = vmatpush3.bf16.msra.mxu1 %v930_v12 }
  0x5b   :  { %635 = vmatprep.subr.bf16.mxu1 %v819_v0  ;;  %628 = vmatpush3.bf16.msra.mxu0 %v704_v30 }
  0x5c   :  { %629 = vmatprep.subr.bf16.mxu0 %v819_v0 }
  0x5f   :  { %630 = vmatpush3.bf16.msra.mxu0 %v705_v31 }
  0x60   :  { %641 = vmatprep.subr.bf16.mxu0 %v819_v0 }
 0x101   :  { %v180_v20 = vpop.f32.mrf.mxu0 }
 0x102   :  { %v181_v21 = vadd.f32 %v943_v19, %v180_v20 }
 0x103   :  { %v593_v22 = vpop.f32.mrf.mxu0 }
 0x104   :  { %vm186_vm3 = vcmp.gt.f32.partialorder %v181_v21, 0.0  ;;  %v187_v23 = vmul.f32 0.01, %v181_v21 }
 0x105   :  { %v183_v24 = vpop.f32.mrf.mxu0 }
 0x106   :  { %v188_v25 = vsel %vm186_vm3, %v181_v21, %v187_v23 }
 0x107   :  { %v594_v26 = vpop.f32.mrf.mxu0  ;;  %v189_v27 = vpack.c.bf16 %v188_v25, %v188_v25 }
 0x109   :  { %612 = vmatmul.mubr.bf16.vlgmr.msra.gmra.mxu1 %v189_v27 }
 0x10a   :  { %636 = vmatpush3.bf16.msra.mxu1 %v144_v3  ;;  %637 = vmatprep.mubr.msk.bf16.mxu1 %vm820_vm0, %v819_v0 }
 0x10b   :  { %661 = vmatprep.subr.bf16.mxu1 %v819_v0 }
 0x111   :  { %638 = vmatmul.mubr.msk.bf16.vlgmr.msra.gmra.mxu1 %vm138_vm2, %v384_v29 }
 0x112   :  { %662 = vmatpush3.bf16.msra.mxu1 %v698_v13  ;;  %677 = vmatprep.mubr.msk.bf16.mxu1 %vm820_vm0, %v819_v0 }
 0x113   :  { %663 = vmatprep.subr.bf16.mxu1 %v819_v0 }
 0x116   :  { %664 = vmatpush3.bf16.msra.mxu1 %v699_v14 }
 0x117   :  { %665 = vmatprep.subr.bf16.mxu1 %v819_v0 }
 0x11a   :  { %666 = vmatpush3.bf16.msra.mxu1 %v700_v15 }
 0x11b   :  { %667 = vmatprep.subr.bf16.mxu1 %v819_v0 }
 0x11e   :  { %668 = vmatpush3.bf16.msra.mxu1 %v701_v16 }
 0x11f   :  { %669 = vmatprep.subr.bf16.mxu1 %v819_v0 }
 0x122   :  { %670 = vmatpush3.bf16.msra.mxu1 %v702_v17 }
 0x123   :  { %671 = vmatprep.subr.bf16.mxu1 %v819_v0 }
 0x126   :  { %672 = vmatpush3.bf16.msra.mxu1 %v703_v18 }
 0x127   :  { %673 = vmatprep.subr.bf16.mxu1 %v819_v0 }
 0x12a   :  { %674 = vmatpush3.bf16.msra.mxu1 %v704_v30 }
 0x12b   :  { %675 = vmatprep.subr.bf16.mxu1 %v819_v0 }
 0x12e   :  { %676 = vmatpush3.bf16.msra.mxu1 %v705_v31 }
 0x1c9   :  { %v278_v33 = vpop.f32.mrf.mxu1 }
 0x1ca   :  { %v279_v34 = vadd.f32 %v530_v32, %v278_v33 }
 0x1cb   :  { %v613_v35 = vpop.f32.mrf.mxu1 }
 0x1cc   :  { %vm284_vm4 = vcmp.gt.f32.partialorder %v279_v34, 0.0  ;;  %v285_v36 = vmul.f32 0.01, %v279_v34 }
 0x1cd   :  { %v281_v37 = vpop.f32.mrf.mxu1 }
 0x1ce   :  { %v286_v38 = vsel %vm284_vm4, %v279_v34, %v285_v36 }
 0x1cf   :  { %v287_v39 = vpack.c.bf16 %v286_v38, %v286_v38  ;;  %v614_v40 = vpop.f32.mrf.mxu1 }
 0x1d1   :  { %632 = vmatmul.mubr.bf16.vlgmr.msra.gmra.mxu0 %v287_v39  ;;  %v422_v41 = vpop.f32.mrf.mxu1 }
 0x1d2   :  { %642 = vmatpush3.bf16.msra.mxu0 %v898_v5  ;;  %657 = vmatprep.mubr.msk.bf16.mxu0 %vm820_vm0, %v819_v0  ;;  %v423_v45 = vadd.f32 %v943_v19, %v422_v41 }
 0x1d3   :  { %643 = vmatprep.subr.bf16.mxu0 %v819_v0  ;;  %v639_v42 = vpop.f32.mrf.mxu1 }
 0x1d4   :  { %v429_v46 = vmul.f32 0.01, %v423_v45  ;;  %vm428_vm5 = vcmp.gt.f32.partialorder %v423_v45, 0.0 }
 0x1d5   :  { %v425_v43 = vpop.f32.mrf.mxu1 }
 0x1d6   :  { %644 = vmatpush3.bf16.msra.mxu0 %v901_v6  ;;  %v430_v47 = vsel %vm428_vm5, %v423_v45, %v429_v46 }
 0x1d7   :  { %645 = vmatprep.subr.bf16.mxu0 %v819_v0  ;;  %v640_v44 = vpop.f32.mrf.mxu1  ;;  %v431_v48 = vpack.c.bf16 %v430_v47, %v430_v47 }
 0x1da   :  { %646 = vmatpush3.bf16.msra.mxu0 %v906_v7 }
 0x1db   :  { %647 = vmatprep.subr.bf16.mxu0 %v819_v0 }
 0x1de   :  { %648 = vmatpush3.bf16.msra.mxu0 %v912_v8 }
 0x1df   :  { %649 = vmatprep.subr.bf16.mxu0 %v819_v0 }
 0x1e2   :  { %650 = vmatpush3.bf16.msra.mxu0 %v917_v9 }
 0x1e3   :  { %651 = vmatprep.subr.bf16.mxu0 %v819_v0 }
 0x1e6   :  { %652 = vmatpush3.bf16.msra.mxu0 %v921_v10 }
 0x1e7   :  { %653 = vmatprep.subr.bf16.mxu0 %v819_v0 }
 0x1ea   :  { %654 = vmatpush3.bf16.msra.mxu0 %v926_v11 }
 0x1eb   :  { %655 = vmatprep.subr.bf16.mxu0 %v819_v0 }
 0x1ee   :  { %656 = vmatpush3.bf16.msra.mxu0 %v930_v12 }
 0x1f1   :  { %658 = vmatmul.mubr.bf16.vlgmr.msra.gmra.mxu0 %v431_v48 }
 0x291   :  { %v376_v50 = vpop.f32.mrf.mxu0 }
 0x292   :  { %v377_v51 = vadd.f32 %v539_v49, %v376_v50 }
 0x293   :  { %v633_v52 = vpop.f32.mrf.mxu0 }
 0x294   :  { %382 = vst [vmem:[%s999_s8] sm:$0xff] %v377_v51 }
 0x295   :  { %v379_v53 = vpop.f32.mrf.mxu0 }
 0x297   :  { %v634_v54 = vpop.f32.mrf.mxu0 }
 0x2b1   :  { %v466_v55 = vpop.f32.mrf.mxu0 }
 0x2b2   :  { %v467_v56 = vadd.f32 %v530_v32, %v466_v55 }
 0x2b3   :  { %v659_v57 = vpop.f32.mrf.mxu0 }
 0x2b4   :  { %vm472_vm6 = vcmp.gt.f32.partialorder %v467_v56, 0.0  ;;  %v473_v58 = vmul.f32 0.01, %v467_v56 }
 0x2b5   :  { %v469_v59 = vpop.f32.mrf.mxu0 }
 0x2b6   :  { %v474_v60 = vsel %vm472_vm6, %v467_v56, %v473_v58 }
 0x2b7   :  { %v475_v61 = vpack.c.bf16 %v474_v60, %v474_v60  ;;  %v660_v62 = vpop.f32.mrf.mxu0 }
 0x2b9   :  { %678 = vmatmul.mubr.bf16.vlgmr.msra.gmra.mxu1 %v475_v61 }
 0x379   :  { %v510_v63 = vpop.f32.mrf.mxu1 }
 0x37a   :  { %v511_v0 = vadd.f32 %v539_v49, %v510_v63 }
 0x37b   :  { %v679_v1 = vpop.f32.mrf.mxu1 }
 0x37c   :  { %516 = vst [vmem:[%s1000_s9] sm:$0xff] %v511_v0 }
 0x37d   :  { %v513_v2 = vpop.f32.mrf.mxu1 }
 0x37f   :  { %v680_v3 = vpop.f32.mrf.mxu1 }
 0x380   :  { %525 = vsyncpa [#allocation3], 1 }
 0x381   :  { %526 = vsyncpa [#allocation5], 1 }
 0x382   :  { %527 = vsyncpa [#allocation8], 1 }

</bundles_post_ra>
